<compile_context>
chip_gen: v7x
topology: tpu7x:2x2x1
jax: 0.10.0
libtpu: 0.0.40
codegen_flags: <defaults>
</compile_context>

<pallas_src>
import math
import functools

import numpy as np
import jax
import jax.numpy as jnp
from jax.experimental import pallas as pl
from jax.experimental.pallas import tpu as pltpu

# The blur filter used by the module (classic [1, 2, 1] anti-alias tap).
BLUR_FILTER = [1.0, 2.0, 1.0]

_VMEM_BLOCK_BUDGET = 32 * 1024 * 1024   # bytes for (double-buffered) blocks
_VMEM_LIMIT = 48 * 1024 * 1024          # scoped VMEM limit, safe on v5e/v6e/v7x


def _filter_1d():
    """Normalized separable 1-D taps: outer(f1d, f1d) == the module's 2-D filter."""
    f = np.asarray(BLUR_FILTER, dtype=np.float64)
    f = f / f.sum()
    return tuple(float(v) for v in f)


def _blurpool_kernel(x_ref, o_ref, *, w, ho, wo):
    """Separable depthwise blur, stride 2, channel-as-lane layout.

    x_ref : (2, Hp, Wp2, TB) with x_ref[p, i, j, c] == xpad[i, 2*j + p] for chan c
    o_ref : (Ho, Wo, TB)
    """
    k = len(w)
    hp = x_ref.shape[1]          # even (wrapper pads to even); extra row unused
    wp2 = x_ref.shape[2]
    tb = x_ref.shape[3]
    acc_dt = jnp.float32

    # Vertical (row) k-tap at stride 2, separately for each column phase.
    vph = []
    for p in range(2):
        # Split rows into even/odd phases with a free reshape of the untiled
        # leading dim — the tiled (Wp2, TB) dims are untouched, so no relayout.
        xv = x_ref[p].reshape(hp // 2, 2, wp2, tb)
        rows = (xv[:, 0], xv[:, 1])                    # each (Hp//2, Wp2, TB)
        acc = w[0] * rows[0][0:ho].astype(acc_dt)      # init with first tap
        for di in range(1, k):
            tap = rows[di % 2][di // 2:di // 2 + ho].astype(acc_dt)
            acc = acc + w[di] * tap
        vph.append(acc)                                # (Ho, Wp2, TB) float32

    # Horizontal (column) k-tap at stride 2: unit-stride sublane slices only.
    out = w[0] * vph[0][:, 0:wo, :]
    for dj in range(1, k):
        out = out + w[dj] * vph[dj % 2][:, dj // 2:dj // 2 + wo, :]
    o_ref[...] = out.astype(o_ref.dtype)


def downsampling(x: jax.Array) -> jax.Array:
    """Forward pass of `Downsampling` for NCHW input `x`."""
    n, c, h, wdt = x.shape
    k = len(BLUR_FILTER)
    pad_lo = (k - 1) // 2
    pad_hi = int(math.ceil((k - 1) / 2))

    # ReflectionPad2d — matches torch 'reflect'.
    xp = jnp.pad(x, ((0, 0), (0, 0), (pad_lo, pad_hi), (pad_lo, pad_hi)),
                 mode="reflect")
    hp, wp = xp.shape[2], xp.shape[3]
    ho = (hp - k) // 2 + 1
    wo = (wp - k) // 2 + 1

    # Round padded H/W up to even so the 2-phase splits are rectangular.
    # (The extra row/column, if any, is never read by the kernel.)
    hp_e, wp_e = hp + (hp % 2), wp + (wp % 2)
    if (hp_e, wp_e) != (hp, wp):
        xp = jnp.pad(xp, ((0, 0), (0, 0), (0, hp_e - hp), (0, wp_e - wp)))
    wp2 = wp_e // 2
    b = n * c

    # Single fused layout transform (one HBM materialization under jit):
    # (N,C,Hp,Wp) -> (2, Hp, Wp2, N*C): even/odd-column phases, channel-last.
    xps = xp.reshape(n, c, hp_e, wp2, 2)
    xps = jnp.transpose(xps, (4, 2, 3, 0, 1)).reshape(2, hp_e, wp2, b)

    # Channel block size: largest slab whose (double-buffered) blocks fit the
    # VMEM budget; a multiple of 128 lanes whenever the channel axis is split.
    itemsize = int(np.dtype(x.dtype).itemsize)
    per_chan = (2 * hp_e * wp2 + ho * wo) * itemsize * 2   # x2: double buffering
    if b * per_chan <= _VMEM_BLOCK_BUDGET:
        tb = b
    else:
        tb = min(max(128, (_VMEM_BLOCK_BUDGET // per_chan) // 128 * 128), b)
    if tb == b and b >= 256:
        # Split into >=2 grid steps so both TensorCores (v7x megacore) get work.
        tb = ((b + 1) // 2 + 127) // 128 * 128
    tb = min(tb, b)
    grid = (pl.cdiv(b, tb),)

    kernel = functools.partial(_blurpool_kernel, w=_filter_1d(), ho=ho, wo=wo)

    cost = pl.CostEstimate(
        flops=int(2 * k * k * b * ho * wo),
        transcendentals=0,
        bytes_accessed=int((xps.size + b * ho * wo) * itemsize),
    )

    out_t = pl.pallas_call(
        kernel,
        out_shape=jax.ShapeDtypeStruct((ho, wo, b), x.dtype),
        grid=grid,
        in_specs=[pl.BlockSpec((2, hp_e, wp2, tb), lambda i: (0, 0, 0, i))],
        out_specs=pl.BlockSpec((ho, wo, tb), lambda i: (0, 0, i)),
        compiler_params=pltpu.CompilerParams(
            dimension_semantics=("parallel",),
            vmem_limit_bytes=_VMEM_LIMIT,
        ),
        cost_estimate=cost,
    )(xps)

    # Back to NCHW (layout plumbing only; output is 4x smaller than the input).
    return out_t.reshape(ho, wo, n, c).transpose(2, 3, 0, 1)


def _reference(x: jax.Array) -> jax.Array:
    """Pure-JAX reference: reflection pad + depthwise stride-2 conv."""
    n, c, h, wdt = x.shape
    k = len(BLUR_FILTER)
    pad_lo = (k - 1) // 2
    pad_hi = int(math.ceil((k - 1) / 2))
    xp = jnp.pad(x, ((0, 0), (0, 0), (pad_lo, pad_hi), (pad_lo, pad_hi)),
                 mode="reflect")
    f = np.asarray(BLUR_FILTER, dtype=np.float32)
    f2 = f[:, None] * f[None, :]
    filt = jnp.asarray(f2 / f2.sum(), dtype=x.dtype)
    weights = jnp.broadcast_to(filt[None, None, :, :], (c, 1, k, k))
    return jax.lax.conv_general_dilated(
        xp, weights, window_strides=(2, 2), padding="VALID",
        dimension_numbers=("NCHW", "OIHW", "NCHW"), feature_group_count=c)


if __name__ == "__main__":
    key = jax.random.PRNGKey(0)
    x = jax.random.normal(key, (2, 4, 16, 16), dtype=jnp.float32)

    fwd = jax.jit(downsampling)
    out = jax.block_until_ready(fwd(x))

    assert out.shape == (2, 4, 8, 8), out.shape
    ref = jax.block_until_ready(_reference(x))
    assert bool(jnp.allclose(out, ref, atol=1e-5, rtol=1e-5)), (
        float(jnp.max(jnp.abs(out - ref))))

    print("KERNEL_OK")
</pallas_src>

<mosaic_0001>
module attributes {stable_mosaic.version = 11 : i64} {
  func.func @_blurpool_kernel(%arg0: i32, %arg1: memref<2x18x9x8xf32, #tpu.memory_space<vmem>>, %arg2: memref<8x8x8xf32, #tpu.memory_space<vmem>>) attributes {dimension_semantics = [#tpu.dimension_semantics<parallel>], iteration_bounds = array<i64: 1>, scalar_prefetch = 0 : i64, scratch_operands = 0 : i64, tpu.core_type = #tpu.core_type<tc>, window_params = [{transform_indices = @transform_0, window_bounds = array<i64: 2, 18, 9, 8>}, {transform_indices = @transform_1, window_bounds = array<i64: 8, 8, 8>}]} {
    %c0 = arith.constant 0 : index
    %c0_0 = arith.constant 0 : index
    %c0_1 = arith.constant 0 : index
    %c0_2 = arith.constant 0 : index
    %0 = vector.load %arg1[%c0, %c0_0, %c0_1, %c0_2] : memref<2x18x9x8xf32, #tpu.memory_space<vmem>>, vector<1x18x9x8xf32>
    %1 = vector.shape_cast %0 : vector<1x18x9x8xf32> to vector<18x9x8xf32>
    %2 = vector.shape_cast %1 : vector<18x9x8xf32> to vector<9x2x9x8xf32>
    %3 = vector.extract_strided_slice %2 {offsets = [0, 0, 0, 0], sizes = [9, 1, 9, 8], strides = [1, 1, 1, 1]} : vector<9x2x9x8xf32> to vector<9x1x9x8xf32>
    %4 = vector.shape_cast %3 : vector<9x1x9x8xf32> to vector<9x9x8xf32>
    %5 = vector.extract_strided_slice %2 {offsets = [0, 1, 0, 0], sizes = [9, 1, 9, 8], strides = [1, 1, 1, 1]} : vector<9x2x9x8xf32> to vector<9x1x9x8xf32>
    %6 = vector.shape_cast %5 : vector<9x1x9x8xf32> to vector<9x9x8xf32>
    %7 = vector.extract_strided_slice %4 {offsets = [0, 0, 0], sizes = [8, 9, 8], strides = [1, 1, 1]} : vector<9x9x8xf32> to vector<8x9x8xf32>
    %cst = arith.constant 2.500000e-01 : f32
    %8 = vector.broadcast %cst : f32 to vector<8x9x8xf32>
    %9 = arith.mulf %8, %7 : vector<8x9x8xf32>
    %10 = vector.extract_strided_slice %6 {offsets = [0, 0, 0], sizes = [8, 9, 8], strides = [1, 1, 1]} : vector<9x9x8xf32> to vector<8x9x8xf32>
    %cst_3 = arith.constant 5.000000e-01 : f32
    %11 = vector.broadcast %cst_3 : f32 to vector<8x9x8xf32>
    %12 = arith.mulf %11, %10 : vector<8x9x8xf32>
    %13 = arith.addf %9, %12 : vector<8x9x8xf32>
    %14 = vector.extract_strided_slice %4 {offsets = [1, 0, 0], sizes = [8, 9, 8], strides = [1, 1, 1]} : vector<9x9x8xf32> to vector<8x9x8xf32>
    %cst_4 = arith.constant 2.500000e-01 : f32
    %15 = vector.broadcast %cst_4 : f32 to vector<8x9x8xf32>
    %16 = arith.mulf %15, %14 : vector<8x9x8xf32>
    %17 = arith.addf %13, %16 : vector<8x9x8xf32>
    %c1 = arith.constant 1 : index
    %c0_5 = arith.constant 0 : index
    %c0_6 = arith.constant 0 : index
    %c0_7 = arith.constant 0 : index
    %18 = vector.load %arg1[%c1, %c0_5, %c0_6, %c0_7] : memref<2x18x9x8xf32, #tpu.memory_space<vmem>>, vector<1x18x9x8xf32>
    %19 = vector.shape_cast %18 : vector<1x18x9x8xf32> to vector<18x9x8xf32>
    %20 = vector.shape_cast %19 : vector<18x9x8xf32> to vector<9x2x9x8xf32>
    %21 = vector.extract_strided_slice %20 {offsets = [0, 0, 0, 0], sizes = [9, 1, 9, 8], strides = [1, 1, 1, 1]} : vector<9x2x9x8xf32> to vector<9x1x9x8xf32>
    %22 = vector.shape_cast %21 : vector<9x1x9x8xf32> to vector<9x9x8xf32>
    %23 = vector.extract_strided_slice %20 {offsets = [0, 1, 0, 0], sizes = [9, 1, 9, 8], strides = [1, 1, 1, 1]} : vector<9x2x9x8xf32> to vector<9x1x9x8xf32>
    %24 = vector.shape_cast %23 : vector<9x1x9x8xf32> to vector<9x9x8xf32>
    %25 = vector.extract_strided_slice %22 {offsets = [0, 0, 0], sizes = [8, 9, 8], strides = [1, 1, 1]} : vector<9x9x8xf32> to vector<8x9x8xf32>
    %cst_8 = arith.constant 2.500000e-01 : f32
    %26 = vector.broadcast %cst_8 : f32 to vector<8x9x8xf32>
    %27 = arith.mulf %26, %25 : vector<8x9x8xf32>
    %28 = vector.extract_strided_slice %24 {offsets = [0, 0, 0], sizes = [8, 9, 8], strides = [1, 1, 1]} : vector<9x9x8xf32> to vector<8x9x8xf32>
    %cst_9 = arith.constant 5.000000e-01 : f32
    %29 = vector.broadcast %cst_9 : f32 to vector<8x9x8xf32>
    %30 = arith.mulf %29, %28 : vector<8x9x8xf32>
    %31 = arith.addf %27, %30 : vector<8x9x8xf32>
    %32 = vector.extract_strided_slice %22 {offsets = [1, 0, 0], sizes = [8, 9, 8], strides = [1, 1, 1]} : vector<9x9x8xf32> to vector<8x9x8xf32>
    %cst_10 = arith.constant 2.500000e-01 : f32
    %33 = vector.broadcast %cst_10 : f32 to vector<8x9x8xf32>
    %34 = arith.mulf %33, %32 : vector<8x9x8xf32>
    %35 = arith.addf %31, %34 : vector<8x9x8xf32>
    %36 = vector.extract_strided_slice %17 {offsets = [0, 0, 0], sizes = [8, 8, 8], strides = [1, 1, 1]} : vector<8x9x8xf32> to vector<8x8x8xf32>
    %cst_11 = arith.constant 2.500000e-01 : f32
    %37 = vector.broadcast %cst_11 : f32 to vector<8x8x8xf32>
    %38 = arith.mulf %37, %36 : vector<8x8x8xf32>
    %39 = vector.extract_strided_slice %35 {offsets = [0, 0, 0], sizes = [8, 8, 8], strides = [1, 1, 1]} : vector<8x9x8xf32> to vector<8x8x8xf32>
    %cst_12 = arith.constant 5.000000e-01 : f32
    %40 = vector.broadcast %cst_12 : f32 to vector<8x8x8xf32>
    %41 = arith.mulf %40, %39 : vector<8x8x8xf32>
    %42 = arith.addf %38, %41 : vector<8x8x8xf32>
    %43 = vector.extract_strided_slice %17 {offsets = [0, 1, 0], sizes = [8, 8, 8], strides = [1, 1, 1]} : vector<8x9x8xf32> to vector<8x8x8xf32>
    %cst_13 = arith.constant 2.500000e-01 : f32
    %44 = vector.broadcast %cst_13 : f32 to vector<8x8x8xf32>
    %45 = arith.mulf %44, %43 : vector<8x8x8xf32>
    %46 = arith.addf %42, %45 : vector<8x8x8xf32>
    %c0_14 = arith.constant 0 : index
    %c0_15 = arith.constant 0 : index
    %c0_16 = arith.constant 0 : index
    %47 = vector.load %arg2[%c0_14, %c0_15, %c0_16] : memref<8x8x8xf32, #tpu.memory_space<vmem>>, vector<8x8x8xf32>
    tpu.vector_store %arg2[%c0_14, %c0_15, %c0_16], %46 {strides = array<i32>} : memref<8x8x8xf32, #tpu.memory_space<vmem>>, vector<8x8x8xf32>,
    return
  }
  func.func @transform_0(%arg0: i32) -> (i32, i32, i32, i32) {
    %c0_i32 = arith.constant 0 : i32
    %c0_i32_0 = arith.constant 0 : i32
    %c0_i32_1 = arith.constant 0 : i32
    %c0_i32_2 = arith.constant 0 : i32
    return %c0_i32, %c0_i32_0, %c0_i32_1, %arg0 : i32, i32, i32, i32
  }
  func.func @transform_1(%arg0: i32) -> (i32, i32, i32) {
    %c0_i32 = arith.constant 0 : i32
    %c0_i32_0 = arith.constant 0 : i32
    %c0_i32_1 = arith.constant 0 : i32
    return %c0_i32, %c0_i32_0, %arg0 : i32, i32, i32
  }
}

</mosaic_0001>

<bundles_post_ra>
// kernel: downsampling.1
= control target key start
LH: loop header
LB: loop body
LE: loop exit
PB: predicated region body
PF: predicated region fallthrough
CT: control target
= control target key end

     0   :  { %vm207_vm0 = vcmask 1046528   ;;  %vm248_vm1 = vcmask 64512   ;;  %s481_s0 = inlined_call_operand.vmem [shape: f32[2,18,9,8], index: 0, kind: input, shape index: {}]   ;;  %s482_s1 = inlined_call_operand.vmem [shape: f32[8,8,8], index: 1, kind: output, shape index: {}]  }
   0x1   :  { %v8_v0 = vld [vmem:[%s481_s0] sm:$0xff]  ;;  %v9_v1 = vld [vmem:[%s481_s0 + $0x8] sm:$0x1]  ;;  %v10_v2 = vld [vmem:[%s481_s0 + $0x10] sm:$0xff] }
   0x2   :  { %v11_v3 = vld [vmem:[%s481_s0 + $0x18] sm:$0x1]  ;;  %v12_v4 = vld [vmem:[%s481_s0 + $0x20] sm:$0xff]  ;;  %v13_v5 = vld [vmem:[%s481_s0 + $0x28] sm:$0x1]  ;;  %v42_v6 = vmul.f32 0.25, %v8_v0 }
   0x3   :  { %v43_v7 = vmul.f32 0.25, %v9_v1  ;;  %v44_v8 = vmul.f32 0.25, %v12_v4  ;;  %v45_v9 = vmul.f32 0.25, %v13_v5  ;;  %v58_v10 = vmul.f32 0.5, %v10_v2  ;;  %v261_v11 = vld [vmem:[%s481_s0 + $0x120] sm:$0xff]  ;;  %v262_v12 = vld [vmem:[%s481_s0 + $0x130] sm:$0xff] }
   0x4   :  { %v59_v13 = vmul.f32 0.5, %v11_v3  ;;  %v263_v14 = vld [vmem:[%s481_s0 + $0x140] sm:$0xff]  ;;  %v126_v15 = vmul.f32 0.25, %v261_v11  ;;  %v134_v16 = vmul.f32 0.5, %v262_v12  ;;  %v14_v17 = vld [vmem:[%s481_s0 + $0x30] sm:$0xff] }
   0x5   :  { %v16_v18 = vld [vmem:[%s481_s0 + $0x40] sm:$0xff]  ;;  %v74_v19 = vadd.f32 %v58_v10, %v42_v6  ;;  %v127_v20 = vmul.f32 0.25, %v263_v14  ;;  %v15_v21 = vld [vmem:[%s481_s0 + $0x38] sm:$0x1]  ;;  %v17_v22 = vld [vmem:[%s481_s0 + $0x48] sm:$0x1] }
   0x6   :  { %v46_v23 = vmul.f32 0.25, %v16_v18  ;;  %v75_v24 = vadd.f32 %v59_v13, %v43_v7  ;;  %v142_v25 = vadd.f32 %v134_v16, %v126_v15  ;;  %v47_v26 = vmul.f32 0.25, %v17_v22  ;;  %v264_v28 = vld [vmem:[%s481_s0 + $0x150] sm:$0xff]  ;;  %v265_v29 = vld [vmem:[%s481_s0 + $0x160] sm:$0xff]  ;;  %v19_v39 = vld [vmem:[%s481_s0 + $0x58] sm:$0x1] }
   0x7   :  { %v60_v27 = vmul.f32 0.5, %v14_v17  ;;  %v92_v30 = vadd.f32 %v74_v19, %v44_v8  ;;  %v61_v31 = vmul.f32 0.5, %v15_v21  ;;  %v128_v32 = vmul.f32 0.25, %v265_v29  ;;  %v18_v34 = vld [vmem:[%s481_s0 + $0x50] sm:$0xff]  ;;  %v20_v35 = vld [vmem:[%s481_s0 + $0x60] sm:$0xff] }
   0x8   :  { %v135_v33 = vmul.f32 0.5, %v264_v28  ;;  %v93_v36 = vadd.f32 %v75_v24, %v45_v9  ;;  %v151_v37 = vadd.f32 %v142_v25, %v127_v20  ;;  %v21_v40 = vld [vmem:[%s481_s0 + $0x68] sm:$0x1]  ;;  %v48_v41 = vmul.f32 0.25, %v20_v35  ;;  %v267_v50 = vld [vmem:[%s481_s0 + $0x180] sm:$0xff]  ;;  %v266_v55 = vld [vmem:[%s481_s0 + $0x170] sm:$0xff] }
   0x9   :  { %v76_v38 = vadd.f32 %v60_v27, %v44_v8  ;;  %v159_v42 = vmul.f32 0.25, %v92_v30  ;;  %v77_v43 = vadd.f32 %v61_v31, %v45_v9  ;;  %v49_v45 = vmul.f32 0.25, %v21_v40  ;;  %v24_v0 = vld [vmem:[%s481_s0 + $0x80] sm:$0xff]  ;;  %v25_v1 = vld [vmem:[%s481_s0 + $0x88] sm:$0x1]  ;;  %v22_v6 = vld [vmem:[%s481_s0 + $0x70] sm:$0xff] }
   0xa   :  { %v143_v44 = vadd.f32 %v135_v33, %v127_v20  ;;  %v167_v46 = vmul.f32 0.5, %v151_v37  ;;  %v183_v47 = vmul.f32 0.25, %v93_v36  ;;  %v62_v49 = vmul.f32 0.5, %v18_v34  ;;  %v23_v7 = vld [vmem:[%s481_s0 + $0x78] sm:$0x1]  ;;  %v269_v12 = vld [vmem:[%s481_s0 + $0x1a0] sm:$0xff] }
   0xb   :  { %v94_v48 = vadd.f32 %v76_v38, %v46_v23  ;;  %v208_v51 = vrot.slane %v159_v42, 1  ;;  %v95_v52 = vadd.f32 %v77_v43, %v47_v26  ;;  %v63_v54 = vmul.f32 0.5, %v19_v39  ;;  %v268_v17 = vld [vmem:[%s481_s0 + $0x190] sm:$0xff]  ;;  %v29_v24 = vld [vmem:[%s481_s0 + $0xa8] sm:$0x1]  ;;  %v271_v34 = vld [vmem:[%s481_s0 + $0x1c0] sm:$0xff] }
   0xc   :  { %v152_v53 = vadd.f32 %v143_v44, %v128_v32  ;;  %v175_v56 = vadd.f32 %v167_v46, %v159_v42  ;;  %v209_v57 = vrot.slane %v183_v47, 1  ;;  %v78_v59 = vadd.f32 %v62_v49, %v46_v23  ;;  %v26_v18 = vld [vmem:[%s481_s0 + $0x90] sm:$0xff]  ;;  %v28_v23 = vld [vmem:[%s481_s0 + $0xa0] sm:$0xff]  ;;  %v27_v33 = vld [vmem:[%s481_s0 + $0x98] sm:$0x1] }
   0xd   :  { %v160_v58 = vmul.f32 0.25, %v94_v48  ;;  %v184_v61 = vmul.f32 0.25, %v95_v52  ;;  %v79_v62 = vadd.f32 %v63_v54, %v47_v26  ;;  %v129_v63 = vmul.f32 0.25, %v267_v50  ;;  %v270_v39 = vld [vmem:[%s481_s0 + $0x1b0] sm:$0xff]  ;;  %v32_v44 = vld [vmem:[%s481_s0 + $0xc0] sm:$0xff] }
   0xe   :  { %v168_v60 = vmul.f32 0.5, %v152_v53  ;;  %v210_v2 = vsel %vm207_vm0, %v208_v51, %v209_v57  ;;  %v96_v4 = vadd.f32 %v78_v59, %v48_v41  ;;  %v136_v5 = vmul.f32 0.5, %v266_v55  ;;  %v30_v53 = vld [vmem:[%s481_s0 + $0xb0] sm:$0xff]  ;;  %v33_v54 = vld [vmem:[%s481_s0 + $0xc8] sm:$0x1] }
   0xf   :  { %v211_v3 = vrot.slane %v160_v58, 1  ;;  %v240_v8 = vadd.f32 %v210_v2, %v175_v56  ;;  %v212_v10 = vrot.slane %v184_v61, 1  ;;  %v97_v11 = vadd.f32 %v79_v62, %v49_v45 }
  0x10   :  { %v176_v9 = vadd.f32 %v168_v60, %v160_v58  ;;  %v144_v13 = vadd.f32 %v136_v5, %v128_v32  ;;  %v161_v14 = vmul.f32 0.25, %v96_v4  ;;  %v50_v15 = vmul.f32 0.25, %v24_v0  ;;  %v31_v58 = vld [vmem:[%s481_s0 + $0xb8] sm:$0x1]  ;;  %v273_v0 = vld [vmem:[%s481_s0 + $0x1e0] sm:$0xff]  ;;  %v272_v5 = vld [vmem:[%s481_s0 + $0x1d0] sm:$0xff] }
  0x11   :  { %v51_v16 = vmul.f32 0.25, %v25_v1  ;;  %249 = vst.msk [vmem:[%s482_s1] sm:$0xff] %vm248_vm1, %v240_v8  ;;  %v213_v19 = vsel %vm207_vm0, %v211_v3, %v212_v10  ;;  %v185_v20 = vmul.f32 0.25, %v97_v11  ;;  %v64_v21 = vmul.f32 0.5, %v22_v6  ;;  %v36_v10 = vld [vmem:[%s481_s0 + $0xe0] sm:$0xff] }
  0x12   :  { %v65_v22 = vmul.f32 0.5, %v23_v7  ;;  %v241_v25 = vadd.f32 %v213_v19, %v176_v9  ;;  %v153_v26 = vadd.f32 %v144_v13, %v129_v63  ;;  %v214_v27 = vrot.slane %v161_v14, 1  ;;  %v37_v11 = vld [vmem:[%s481_s0 + $0xe8] sm:$0x1] }
  0x13   :  { %v130_v28 = vmul.f32 0.25, %v269_v12  ;;  %v215_v29 = vrot.slane %v185_v20, 1  ;;  %v80_v30 = vadd.f32 %v64_v21, %v48_v41  ;;  %v137_v32 = vmul.f32 0.5, %v268_v17  ;;  %v35_v21 = vld [vmem:[%s481_s0 + $0xd8] sm:$0x1] }
  0x14   :  { %v81_v31 = vadd.f32 %v65_v22, %v49_v45  ;;  %250 = vst.msk [vmem:[%s482_s1 + $0x8] sm:$0xff] %vm248_vm1, %v241_v25  ;;  %v169_v35 = vmul.f32 0.5, %v153_v26  ;;  %v52_v36 = vmul.f32 0.25, %v28_v23  ;;  %v53_v37 = vmul.f32 0.25, %v29_v24  ;;  %v275_v22 = vld [vmem:[%s481_s0 + $0x200] sm:$0xff] }
  0x15   :  { %v66_v38 = vmul.f32 0.5, %v26_v18  ;;  %v216_v40 = vsel %vm207_vm0, %v214_v27, %v215_v29  ;;  %v98_v41 = vadd.f32 %v80_v30, %v50_v15  ;;  %v145_v43 = vadd.f32 %v137_v32, %v129_v63  ;;  %v38_v32 = vld [vmem:[%s481_s0 + $0xf0] sm:$0xff] }
  0x16   :  { %v99_v42 = vadd.f32 %v81_v31, %v51_v16  ;;  %v177_v45 = vadd.f32 %v169_v35, %v161_v14  ;;  %v67_v46 = vmul.f32 0.5, %v27_v33  ;;  %v131_v48 = vmul.f32 0.25, %v271_v34  ;;  %v274_v31 = vld [vmem:[%s481_s0 + $0x1f0] sm:$0xff] }
  0x17   :  { %v82_v47 = vadd.f32 %v66_v38, %v50_v15  ;;  %v154_v49 = vadd.f32 %v145_v43, %v130_v28  ;;  %v162_v50 = vmul.f32 0.25, %v98_v41  ;;  %v138_v52 = vmul.f32 0.5, %v270_v39 }
  0x18   :  { %v186_v51 = vmul.f32 0.25, %v99_v42  ;;  %v242_v55 = vadd.f32 %v216_v40, %v177_v45  ;;  %v83_v56 = vadd.f32 %v67_v46, %v51_v16  ;;  %v54_v59 = vmul.f32 0.25, %v32_v44  ;;  %v34_v16 = vld [vmem:[%s481_s0 + $0xd0] sm:$0xff]  ;;  %v40_v42 = vld [vmem:[%s481_s0 + $0x100] sm:$0xff] }
  0x19   :  { %v100_v57 = vadd.f32 %v82_v47, %v52_v36  ;;  %v170_v60 = vmul.f32 0.5, %v154_v49  ;;  %v217_v61 = vrot.slane %v162_v50, 1  ;;  %v146_v63 = vadd.f32 %v138_v52, %v130_v28 }
  0x1a   :  { %v218_v62 = vrot.slane %v186_v51, 1  ;;  %251 = vst.msk [vmem:[%s482_s1 + $0x10] sm:$0xff] %vm248_vm1, %v242_v55  ;;  %v101_v1 = vadd.f32 %v83_v56, %v53_v37  ;;  %v55_v3 = vmul.f32 0.25, %v33_v54  ;;  %v68_v4 = vmul.f32 0.5, %v30_v53  ;;  %v276_v56 = vld [vmem:[%s481_s0 + $0x210] sm:$0xff] }
  0x1b   :  { %v163_v2 = vmul.f32 0.25, %v100_v57  ;;  %v178_v6 = vadd.f32 %v170_v60, %v162_v50  ;;  %v155_v8 = vadd.f32 %v146_v63, %v131_v48  ;;  %v69_v9 = vmul.f32 0.5, %v31_v58  ;;  %v41_v50 = vld [vmem:[%s481_s0 + $0x108] sm:$0x1]  ;;  %v277_v57 = vld [vmem:[%s481_s0 + $0x220] sm:$0xff] }
  0x1c   :  { %v219_v7 = vsel %vm207_vm0, %v217_v61, %v218_v62  ;;  %v187_v12 = vmul.f32 0.25, %v101_v1  ;;  %v84_v14 = vadd.f32 %v68_v4, %v52_v36  ;;  %v132_v15 = vmul.f32 0.25, %v273_v0 }
  0x1d   :  { %v220_v13 = vrot.slane %v163_v2, 1  ;;  %v243_v17 = vadd.f32 %v219_v7, %v178_v6  ;;  %v171_v18 = vmul.f32 0.5, %v155_v8  ;;  %v85_v19 = vadd.f32 %v69_v9, %v53_v37  ;;  %v39_v37 = vld [vmem:[%s481_s0 + $0xf8] sm:$0x1] }
  0x1e   :  { %v139_v20 = vmul.f32 0.5, %v272_v5  ;;  %v221_v23 = vrot.slane %v187_v12, 1  ;;  %v102_v24 = vadd.f32 %v84_v14, %v54_v59  ;;  %v56_v25 = vmul.f32 0.25, %v36_v10 }
  0x1f   :  { %v57_v26 = vmul.f32 0.25, %v37_v11  ;;  %252 = vst.msk [vmem:[%s482_s1 + $0x18] sm:$0xff] %vm248_vm1, %v243_v17  ;;  %v179_v27 = vadd.f32 %v171_v18, %v163_v2  ;;  %v103_v28 = vadd.f32 %v85_v19, %v55_v3  ;;  %v70_v30 = vmul.f32 0.5, %v34_v16 }
  0x20   :  { %v147_v29 = vadd.f32 %v139_v20, %v131_v48  ;;  %v222_v33 = vsel %vm207_vm0, %v220_v13, %v221_v23  ;;  %v164_v34 = vmul.f32 0.25, %v102_v24  ;;  %v71_v35 = vmul.f32 0.5, %v35_v21 }
  0x21   :  { %v133_v36 = vmul.f32 0.25, %v275_v22  ;;  %v244_v38 = vadd.f32 %v222_v33, %v179_v27  ;;  %v188_v40 = vmul.f32 0.25, %v103_v28  ;;  %v86_v41 = vadd.f32 %v70_v30, %v54_v59 }
  0x22   :  { %v156_v39 = vadd.f32 %v147_v29, %v132_v15  ;;  %v223_v43 = vrot.slane %v164_v34, 1  ;;  %v87_v44 = vadd.f32 %v71_v35, %v55_v3  ;;  %v140_v45 = vmul.f32 0.5, %v274_v31 }
  0x23   :  { %v72_v46 = vmul.f32 0.5, %v38_v32  ;;  %253 = vst.msk [vmem:[%s482_s1 + $0x20] sm:$0xff] %vm248_vm1, %v244_v38  ;;  %v224_v48 = vrot.slane %v188_v40, 1  ;;  %v104_v49 = vadd.f32 %v86_v41, %v56_v25  ;;  %v73_v51 = vmul.f32 0.5, %v39_v37 }
  0x24   :  { %v172_v47 = vmul.f32 0.5, %v156_v39  ;;  %v105_v52 = vadd.f32 %v87_v44, %v57_v26  ;;  %v148_v53 = vadd.f32 %v140_v45, %v132_v15  ;;  %v90_v55 = vmul.f32 0.25, %v40_v42 }
  0x25   :  { %v88_v54 = vadd.f32 %v72_v46, %v56_v25  ;;  %v225_v59 = vsel %vm207_vm0, %v223_v43, %v224_v48  ;;  %v165_v60 = vmul.f32 0.25, %v104_v49  ;;  %v89_v61 = vadd.f32 %v73_v51, %v57_v26 }
  0x26   :  { %v180_v58 = vadd.f32 %v172_v47, %v164_v34  ;;  %v157_v62 = vadd.f32 %v148_v53, %v133_v36  ;;  %v189_v63 = vmul.f32 0.25, %v105_v52  ;;  %v91_v0 = vmul.f32 0.25, %v41_v50 }
  0x27   :  { %v106_v1 = vadd.f32 %v90_v55, %v88_v54  ;;  %v226_v3 = vrot.slane %v165_v60, 1  ;;  %v141_v4 = vmul.f32 0.5, %v276_v56  ;;  %v150_v5 = vmul.f32 0.25, %v277_v57 }
  0x28   :  { %v245_v2 = vadd.f32 %v225_v59, %v180_v58  ;;  %v173_v6 = vmul.f32 0.5, %v157_v62  ;;  %v227_v7 = vrot.slane %v189_v63, 1  ;;  %v107_v8 = vadd.f32 %v91_v0, %v89_v61 }
  0x29   :  { %v166_v9 = vmul.f32 0.25, %v106_v1  ;;  %v149_v10 = vadd.f32 %v141_v4, %v133_v36 }
  0x2a   :  { %254 = vst.msk [vmem:[%s482_s1 + $0x28] sm:$0xff] %vm248_vm1, %v245_v2  ;;  %v181_v11 = vadd.f32 %v173_v6, %v165_v60  ;;  %v228_v12 = vsel %vm207_vm0, %v226_v3, %v227_v7  ;;  %v190_v13 = vmul.f32 0.25, %v107_v8 }
  0x2b   :  { %v229_v14 = vrot.slane %v166_v9, 1  ;;  %v158_v15 = vadd.f32 %v150_v5, %v149_v10 }
  0x2c   :  { %v246_v16 = vadd.f32 %v228_v12, %v181_v11  ;;  %v230_v17 = vrot.slane %v190_v13, 1 }
  0x2d   :  { %v174_v18 = vmul.f32 0.5, %v158_v15 }
  0x2e   :  { %255 = vst.msk [vmem:[%s482_s1 + $0x30] sm:$0xff] %vm248_vm1, %v246_v16  ;;  %v231_v19 = vsel %vm207_vm0, %v229_v14, %v230_v17 }
  0x2f   :  { %v182_v20 = vadd.f32 %v174_v18, %v166_v9 }
  0x31   :  { %v247_v21 = vadd.f32 %v231_v19, %v182_v20 }
  0x33   :  { %256 = vst.msk [vmem:[%s482_s1 + $0x38] sm:$0xff] %vm248_vm1, %v247_v21 }

</bundles_post_ra>
